<compile_context>
chip_gen: v7x
topology: tpu7x:2x2x1
jax: 0.10.0
libtpu: 0.0.40
codegen_flags: <defaults>
</compile_context>

<pallas_src>
import jax
import jax.numpy as jnp
from jax import lax
from jax.experimental import pallas as pl
from jax.experimental.pallas import tpu as pltpu


def _round_up(n, m):
    return pl.cdiv(n, m) * m


def mlp_kernel(x_ref, w1_ref, b1_ref, w2_ref, b2_ref, w3_ref, b3_ref, o_ref):
    # x_ref : (TILE_B, 2)  batch-major tile straight from HBM
    # w1_ref: (50, 2)   b1_ref: (50, 1)
    # w2_ref: (25, 50)  b2_ref: (25, 1)
    # w3_ref: (25, 1)   b3_ref: (1, 1)
    # o_ref : (1, TILE_B) feature-major (lane-dense) output tile

    # Layer 1: contract the K=2 feature dims (A·B^T form). Result (50, TILE_B) puts
    # the batch on the 128-lane axis -> all later intermediates are lane-dense.
    h1 = lax.dot_general(
        w1_ref[...], x_ref[...],
        dimension_numbers=(((1,), (1,)), ((), ())),
        preferred_element_type=jnp.float32)
    h1 = jnp.maximum(h1 + b1_ref[...], 0.0)                       # (50, TILE_B)

    # Layer 2: (25, 50) @ (50, TILE_B) -> (25, TILE_B), lane-dense MXU matmul.
    h2 = jnp.dot(w2_ref[...], h1, preferred_element_type=jnp.float32)
    h2 = jnp.maximum(h2 + b2_ref[...], 0.0)                       # (25, TILE_B)

    # Layer 3 (25 -> 1): VPU multiply + sublane (XLU) reduction; avoids a degenerate
    # 25x1 MXU matmul and writes a dense (1, TILE_B) row.
    y = jnp.sum(w3_ref[...] * h2, axis=0, keepdims=True) + b3_ref[...]
    o_ref[...] = y.astype(o_ref.dtype)


def prepare_params(w1, b1, w2, b2, w3, b3):
    """One-time conversion from PyTorch layout ((out,in) weights, (out,) biases) to
    the kernel layout. Run once outside the hot path (jit constant-folds it anyway)."""
    return (
        w1,                    # (50, 2)  used as-is via NT dot_general
        b1.reshape(-1, 1),     # (50, 1)  column bias (broadcast over lanes)
        w2,                    # (25, 50) used as-is
        b2.reshape(-1, 1),     # (25, 1)
        w3.reshape(-1, 1),     # (1, 25) -> (25, 1) column for VPU mul + reduce
        b3.reshape(1, 1),      # (1, 1)
    )


def mlp_forward(x, params, *, tile_b=2048):
    """x: (B, 2) float32; params from prepare_params. Returns (B, 1) float32."""
    w1, b1c, w2, b2c, w3c, b3c = params
    B = x.shape[0]

    # Batch tile: multiple of 128 so the output block is lane-dense; don't over-pad
    # tiny batches. Sweep tile_b (2048..16384) per generation if it matters.
    tile_b = _round_up(min(tile_b, _round_up(B, 128)), 128)
    b_pad = _round_up(B, tile_b)
    if b_pad != B:
        x = jnp.pad(x, ((0, b_pad - B), (0, 0)))
    grid = (b_pad // tile_b,)

    def resident(arr):  # full-array block, constant index -> loaded once, stays in VMEM
        return pl.BlockSpec(arr.shape, lambda i: (0, 0))

    out = pl.pallas_call(
        mlp_kernel,
        out_shape=jax.ShapeDtypeStruct((1, b_pad), jnp.float32),
        grid=grid,
        in_specs=[
            pl.BlockSpec((tile_b, 2), lambda i: (i, 0)),        # pipelined x tiles
            resident(w1), resident(b1c),
            resident(w2), resident(b2c),
            resident(w3c), resident(b3c),
        ],
        out_specs=pl.BlockSpec((1, tile_b), lambda i: (0, i)),  # lane-dense output tile
        compiler_params=pltpu.CompilerParams(
            dimension_semantics=("parallel",)),
    )(x, w1, b1c, w2, b2c, w3c, b3c)

    # (1, b_pad) and (B, 1) share the same row-major bytes for the first B elements.
    return out.reshape(-1)[:B].reshape(B, 1)


def init_params(key):
    """Deterministic params matching nn.Linear shapes/init (PyTorch layout)."""
    k1, k2, k3, k4, k5, k6 = jax.random.split(key, 6)

    def lin(kw, kb, n_in, n_out):
        bound = 1.0 / jnp.sqrt(jnp.float32(n_in))
        w = jax.random.uniform(kw, (n_out, n_in), jnp.float32, -bound, bound)
        b = jax.random.uniform(kb, (n_out,), jnp.float32, -bound, bound)
        return w, b

    w1, b1 = lin(k1, k2, 2, 50)
    w2, b2 = lin(k3, k4, 50, 25)
    w3, b3 = lin(k5, k6, 25, 1)
    return w1, b1, w2, b2, w3, b3


def reference_forward(x, w1, b1, w2, b2, w3, b3):
    hi = jax.lax.Precision.HIGHEST
    h = jnp.maximum(jnp.dot(x, w1.T, precision=hi) + b1, 0.0)
    h = jnp.maximum(jnp.dot(h, w2.T, precision=hi) + b2, 0.0)
    return jnp.dot(h, w3.T, precision=hi) + b3


if __name__ == "__main__":
    key = jax.random.PRNGKey(0)
    kx, kx2, kp = jax.random.split(key, 3)

    torch_params = init_params(kp)            # PyTorch-layout params
    params = prepare_params(*torch_params)    # one-time kernel-layout prep

    # Small batch (single tile, padded 8 -> 128).
    B = 8
    x = jax.random.normal(kx, (B, 2), jnp.float32)
    y = jax.block_until_ready(mlp_forward(x, params))
    y_ref = reference_forward(x, *torch_params)
    assert y.shape == (B, 1)
    # Tolerance covers MXU f32 pass-decomposition differences vs the HIGHEST-precision
    # XLA reference; real layout/weight bugs would be off by O(0.1 - 1).
    assert jnp.allclose(y, y_ref, atol=5e-3, rtol=5e-3)

    # Multi-tile + ragged last tile (grid of 3 with tile_b=128, B=300 -> padded 384).
    B2 = 300
    x2 = jax.random.normal(kx2, (B2, 2), jnp.float32)
    y2 = jax.block_until_ready(mlp_forward(x2, params, tile_b=128))
    y2_ref = reference_forward(x2, *torch_params)
    assert y2.shape == (B2, 1)
    assert jnp.allclose(y2, y2_ref, atol=5e-3, rtol=5e-3)

    print("KERNEL_OK")
</pallas_src>

<mosaic_0001>
module attributes {stable_mosaic.version = 11 : i64} {
  func.func @mlp_kernel(%arg0: i32, %arg1: memref<128x2xf32, #tpu.memory_space<vmem>>, %arg2: memref<50x2xf32, #tpu.memory_space<vmem>>, %arg3: memref<50x1xf32, #tpu.memory_space<vmem>>, %arg4: memref<25x50xf32, #tpu.memory_space<vmem>>, %arg5: memref<25x1xf32, #tpu.memory_space<vmem>>, %arg6: memref<25x1xf32, #tpu.memory_space<vmem>>, %arg7: memref<1x1xf32, #tpu.memory_space<vmem>>, %arg8: memref<1x128xf32, #tpu.memory_space<vmem>>) attributes {dimension_semantics = [#tpu.dimension_semantics<parallel>], iteration_bounds = array<i64: 1>, scalar_prefetch = 0 : i64, scratch_operands = 0 : i64, tpu.core_type = #tpu.core_type<tc>, window_params = [{transform_indices = @transform_0, window_bounds = array<i64: 128, 2>}, {pipeline_mode = #tpu.pipeline_mode<synchronous>, transform_indices = @transform_1, window_bounds = array<i64: 50, 2>}, {pipeline_mode = #tpu.pipeline_mode<synchronous>, transform_indices = @transform_2, window_bounds = array<i64: 50, 1>}, {pipeline_mode = #tpu.pipeline_mode<synchronous>, transform_indices = @transform_3, window_bounds = array<i64: 25, 50>}, {pipeline_mode = #tpu.pipeline_mode<synchronous>, transform_indices = @transform_4, window_bounds = array<i64: 25, 1>}, {pipeline_mode = #tpu.pipeline_mode<synchronous>, transform_indices = @transform_5, window_bounds = array<i64: 25, 1>}, {pipeline_mode = #tpu.pipeline_mode<synchronous>, transform_indices = @transform_6, window_bounds = array<i64: 1, 1>}, {transform_indices = @transform_7, window_bounds = array<i64: 1, 128>}]} {
    %c0 = arith.constant 0 : index
    %c0_0 = arith.constant 0 : index
    %0 = vector.load %arg2[%c0, %c0_0] : memref<50x2xf32, #tpu.memory_space<vmem>>, vector<50x2xf32>
    %c0_1 = arith.constant 0 : index
    %c0_2 = arith.constant 0 : index
    %1 = vector.load %arg1[%c0_1, %c0_2] : memref<128x2xf32, #tpu.memory_space<vmem>>, vector<128x2xf32>
    %cst = arith.constant dense<0.000000e+00> : vector<50x128xf32>
    %2 = tpu.matmul %0, %1, %cst {dimension_numbers = #tpu.dot_dimension_numbers<[1], [1], [0], [0], [0, 0, 1, 0], [], []>} : vector<50x2xf32>, vector<128x2xf32>, vector<50x128xf32> -> vector<50x128xf32>
    %c0_3 = arith.constant 0 : index
    %c0_4 = arith.constant 0 : index
    %3 = vector.load %arg3[%c0_3, %c0_4] : memref<50x1xf32, #tpu.memory_space<vmem>>, vector<50x1xf32>
    %4 = vector.broadcast %3 : vector<50x1xf32> to vector<50x128xf32>
    %5 = arith.addf %2, %4 : vector<50x128xf32>
    %cst_5 = arith.constant 0.000000e+00 : f32
    %6 = vector.broadcast %cst_5 : f32 to vector<50x128xf32>
    %7 = arith.maximumf %5, %6 : vector<50x128xf32>
    %c0_6 = arith.constant 0 : index
    %c0_7 = arith.constant 0 : index
    %8 = vector.load %arg4[%c0_6, %c0_7] : memref<25x50xf32, #tpu.memory_space<vmem>>, vector<25x50xf32>
    %cst_8 = arith.constant dense<0.000000e+00> : vector<25x128xf32>
    %9 = tpu.matmul %8, %7, %cst_8 {dimension_numbers = #tpu.dot_dimension_numbers<[1], [0], [0], [1], [0, 0, 1, 1], [], []>} : vector<25x50xf32>, vector<50x128xf32>, vector<25x128xf32> -> vector<25x128xf32>
    %c0_9 = arith.constant 0 : index
    %c0_10 = arith.constant 0 : index
    %10 = vector.load %arg5[%c0_9, %c0_10] : memref<25x1xf32, #tpu.memory_space<vmem>>, vector<25x1xf32>
    %11 = vector.broadcast %10 : vector<25x1xf32> to vector<25x128xf32>
    %12 = arith.addf %9, %11 : vector<25x128xf32>
    %cst_11 = arith.constant 0.000000e+00 : f32
    %13 = vector.broadcast %cst_11 : f32 to vector<25x128xf32>
    %14 = arith.maximumf %12, %13 : vector<25x128xf32>
    %c0_12 = arith.constant 0 : index
    %c0_13 = arith.constant 0 : index
    %15 = vector.load %arg6[%c0_12, %c0_13] : memref<25x1xf32, #tpu.memory_space<vmem>>, vector<25x1xf32>
    %16 = vector.broadcast %15 : vector<25x1xf32> to vector<25x128xf32>
    %17 = arith.mulf %16, %14 : vector<25x128xf32>
    %cst_14 = arith.constant dense<0.000000e+00> : vector<128xf32>
    %18 = vector.multi_reduction <add>, %17, %cst_14 [0] : vector<25x128xf32> to vector<128xf32>
    %19 = vector.shape_cast %18 : vector<128xf32> to vector<1x128xf32>
    %c0_15 = arith.constant 0 : index
    %c0_16 = arith.constant 0 : index
    %20 = vector.load %arg7[%c0_15, %c0_16] : memref<1x1xf32, #tpu.memory_space<vmem>>, vector<1x1xf32>
    %21 = vector.broadcast %20 : vector<1x1xf32> to vector<1x128xf32>
    %22 = arith.addf %19, %21 : vector<1x128xf32>
    %c0_17 = arith.constant 0 : index
    %c0_18 = arith.constant 0 : index
    %23 = vector.load %arg8[%c0_17, %c0_18] : memref<1x128xf32, #tpu.memory_space<vmem>>, vector<1x128xf32>
    tpu.vector_store %arg8[%c0_17, %c0_18], %22 {strides = array<i32>} : memref<1x128xf32, #tpu.memory_space<vmem>>, vector<1x128xf32>,
    return
  }
  func.func @transform_0(%arg0: i32) -> (i32, i32) {
    %c0_i32 = arith.constant 0 : i32
    %c0_i32_0 = arith.constant 0 : i32
    return %arg0, %c0_i32 : i32, i32
  }
  func.func @transform_1(%arg0: i32) -> (i32, i32) {
    %c0_i32 = arith.constant 0 : i32
    %c0_i32_0 = arith.constant 0 : i32
    %c0_i32_1 = arith.constant 0 : i32
    return %c0_i32, %c0_i32_0 : i32, i32
  }
  func.func @transform_2(%arg0: i32) -> (i32, i32) {
    %c0_i32 = arith.constant 0 : i32
    %c0_i32_0 = arith.constant 0 : i32
    %c0_i32_1 = arith.constant 0 : i32
    return %c0_i32, %c0_i32_0 : i32, i32
  }
  func.func @transform_3(%arg0: i32) -> (i32, i32) {
    %c0_i32 = arith.constant 0 : i32
    %c0_i32_0 = arith.constant 0 : i32
    %c0_i32_1 = arith.constant 0 : i32
    return %c0_i32, %c0_i32_0 : i32, i32
  }
  func.func @transform_4(%arg0: i32) -> (i32, i32) {
    %c0_i32 = arith.constant 0 : i32
    %c0_i32_0 = arith.constant 0 : i32
    %c0_i32_1 = arith.constant 0 : i32
    return %c0_i32, %c0_i32_0 : i32, i32
  }
  func.func @transform_5(%arg0: i32) -> (i32, i32) {
    %c0_i32 = arith.constant 0 : i32
    %c0_i32_0 = arith.constant 0 : i32
    %c0_i32_1 = arith.constant 0 : i32
    return %c0_i32, %c0_i32_0 : i32, i32
  }
  func.func @transform_6(%arg0: i32) -> (i32, i32) {
    %c0_i32 = arith.constant 0 : i32
    %c0_i32_0 = arith.constant 0 : i32
    %c0_i32_1 = arith.constant 0 : i32
    return %c0_i32, %c0_i32_0 : i32, i32
  }
  func.func @transform_7(%arg0: i32) -> (i32, i32) {
    %c0_i32 = arith.constant 0 : i32
    %c0_i32_0 = arith.constant 0 : i32
    return %c0_i32, %arg0 : i32, i32
  }
}

</mosaic_0001>

<bundles_post_ra>
// kernel: tpu_custom_call.1
= control target key start
LH: loop header
LB: loop body
LE: loop exit
PB: predicated region body
PF: predicated region fallthrough
CT: control target
= control target key end

     0   :  { %s921_s0 = inlined_call_operand.vmem [shape: f32[128,2], index: 0, kind: input, shape index: {}]   ;;  %s922_s1 = inlined_call_operand.vmem [shape: f32[50,2], index: 1, kind: input, shape index: {}]   ;;  %s923_s2 = inlined_call_operand.vmem [shape: f32[50,1], index: 2, kind: input, shape index: {}]   ;;  %s924_s3 = inlined_call_operand.vmem [shape: f32[25,50], index: 3, kind: input, shape index: {}]   ;;  %s925_s4 = inlined_call_operand.vmem [shape: f32[25,1], index: 4, kind: input, shape index: {}]   ;;  %s926_s5 = inlined_call_operand.vmem [shape: f32[25,1], index: 5, kind: input, shape index: {}]   ;;  %s927_s6 = inlined_call_operand.<no memory space> [shape: f32[1,1], index: 6, kind: input, shape index: {}]   ;;  %s928_s7 = inlined_call_operand.hbm [shape: f32[1,128], index: 7, kind: output, shape index: {}]  }
   0x1   :  { %v12_v0 = vstv %s927_s6 }
   0x2   :  { %13 = vst [vmem:[#allocation2] sm:$0x1] %v12_v0 }
   0x3   :  { %v36_v1 = vld [vmem:[%s921_s0] sm:$0xff]  ;;  %v37_v2 = vld [vmem:[%s921_s0 + $0x8] sm:$0xff]  ;;  %vm94_vm0 = vcmask 15360   ;;  %v680_v3 = vmov 0.0|0.0   ;;  %vm681_vm2 = vmmov 0   ;;  %v682_v6 = vmov 0.0  }
   0x4   :  { %605 = vmatprep.subr.bf16.mxu0 %v680_v3  ;;  %v606_v4 = vpack.c.bf16 %v37_v2, %v36_v1  ;;  %vm737_vm1 = vmpackc.low %vm94_vm0, %vm94_vm0  ;;  %564 = vmatprep.mubr.msk.f32.mxu0 %vm681_vm2, %v682_v6  ;;  %v683_v7 = vmov 0   ;;  %v38_v8 = vld [vmem:[%s921_s0 + $0x10] sm:$0xff]  ;;  %v39_v9 = vld [vmem:[%s921_s0 + $0x18] sm:$0xff] }
   0x5   :  { %654 = vset.pattern.permute.xlu0 %v683_v7  ;;  %655 = vset.pattern.permute.xlu1 %v683_v7  ;;  %v610_v10 = vpack.c.bf16 %v39_v9, %v38_v8  ;;  %v52_v11 = vld [vmem:[%s923_s2] sm:$0xff]  ;;  %v54_v12 = vld [vmem:[%s923_s2 + $0x10] sm:$0xff]  ;;  %v53_v13 = vld [vmem:[%s923_s2 + $0x8] sm:$0xff] }
   0x6   :  { %608 = vmatpush3.bf16.xpose.msk.msra.mxu0 %vm737_vm1, %v606_v4  ;;  %61 = vperm.xlu0 %654, %v52_v11   ;;  %v55_v14 = vld [vmem:[%s923_s2 + $0x18] sm:$0xff]  ;;  %v40_v15 = vld [vmem:[%s921_s0 + $0x20] sm:$0xff]  ;;  %v41_v16 = vld [vmem:[%s921_s0 + $0x28] sm:$0xff] }
   0x7   :  { %609 = vmatprep.subr.bf16.mxu0 %v680_v3  ;;  %71 = vperm.xlu1 %655, %v54_v12  }
   0xa   :  { %66 = vperm.xlu0 %654, %v53_v13  }
   0xb   :  { %76 = vperm.xlu1 %655, %v55_v14  }
   0xe   :  { %612 = vmatpush3.bf16.xpose.msk.msra.mxu0 %vm737_vm1, %v610_v10 }
   0xf   :  { %613 = vmatprep.subr.bf16.mxu0 %v680_v3 }
  0x10   :  { %14 = vsyncpa [#allocation4], 0  ;;  %v56_v17 = vld [vmem:[%s923_s2 + $0x20] sm:$0xff]  ;;  %v57_v18 = vld [vmem:[%s923_s2 + $0x28] sm:$0xff]  ;;  %v614_v19 = vpack.c.bf16 %v41_v16, %v40_v15  ;;  %vm299_vm3 = vcmask 408576   ;;  %vm312_vm4 = vcmask 1041408  }
  0x11   :  { %81 = vperm.xlu0 %654, %v56_v17   ;;  %86 = vperm.xlu1 %655, %v57_v18   ;;  %v58_v20 = vld [vmem:[%s923_s2 + $0x30] sm:$0x3]  ;;  %v275_v21 = vld [vmem:[%s925_s4] sm:$0xff]  ;;  %v43_v23 = vld [vmem:[%s921_s0 + $0x38] sm:$0xff]  ;;  %vm435_vm5 = vcmask 1040384  }
  0x12   :  { %v42_v22 = vld [vmem:[%s921_s0 + $0x30] sm:$0xff]  ;;  %v276_v24 = vld [vmem:[%s925_s4 + $0x8] sm:$0xff]  ;;  %v278_v27 = vld [vmem:[%s925_s4 + $0x18] sm:$0x1] }
  0x13   :  { %v277_v25 = vld [vmem:[%s925_s4 + $0x10] sm:$0xff]  ;;  %v618_v26 = vpack.c.bf16 %v43_v23, %v42_v22  ;;  %v405_v28 = vld [vmem:[%s926_s5] sm:$0xff]  ;;  %v45_v30 = vld [vmem:[%s921_s0 + $0x48] sm:$0xff] }
  0x14   :  { %v44_v29 = vld [vmem:[%s921_s0 + $0x40] sm:$0xff]  ;;  %v406_v31 = vld [vmem:[%s926_s5 + $0x8] sm:$0xff]  ;;  %v407_v32 = vld [vmem:[%s926_s5 + $0x10] sm:$0xff] }
  0x15   :  { %91 = vperm.xlu0 %654, %v58_v20   ;;  %281 = vperm.xlu1 %655, %v275_v21   ;;  %v622_v33 = vpack.c.bf16 %v45_v30, %v44_v29  ;;  %v408_v34 = vld [vmem:[%s926_s5 + $0x18] sm:$0x1]  ;;  %v444_v35 = vld [vmem:[#allocation2] sm:$0x1]  ;;  %v46_v36 = vld [vmem:[%s921_s0 + $0x50] sm:$0xff] }
  0x16   :  { %616 = vmatpush3.bf16.xpose.msk.msra.mxu0 %vm737_vm1, %v614_v19  ;;  %v47_v37 = vld [vmem:[%s921_s0 + $0x58] sm:$0xff]  ;;  %v48_v39 = vld [vmem:[%s921_s0 + $0x60] sm:$0xff]  ;;  %v49_v40 = vld [vmem:[%s921_s0 + $0x68] sm:$0xff] }
  0x17   :  { %617 = vmatprep.subr.bf16.mxu0 %v680_v3  ;;  %v626_v38 = vpack.c.bf16 %v47_v37, %v46_v36  ;;  %v630_v41 = vpack.c.bf16 %v49_v40, %v48_v39  ;;  %v50_v42 = vld [vmem:[%s921_s0 + $0x70] sm:$0xff]  ;;  %v51_v43 = vld [vmem:[%s921_s0 + $0x78] sm:$0xff]  ;;  %v29_v45 = vld [vmem:[%s922_s1] sm:$0xff] }
  0x18   :  { %v634_v44 = vpack.c.bf16 %v51_v43, %v50_v42  ;;  %v30_v46 = vld [vmem:[%s922_s1 + $0x8] sm:$0xff]  ;;  %v31_v47 = vld [vmem:[%s922_s1 + $0x10] sm:$0xff]  ;;  %v32_v48 = vld [vmem:[%s922_s1 + $0x18] sm:$0xff] }
  0x19   :  { %286 = vperm.xlu0 %654, %v276_v24   ;;  %291 = vperm.xlu1 %655, %v277_v25   ;;  %v33_v49 = vld [vmem:[%s922_s1 + $0x20] sm:$0xff]  ;;  %v34_v50 = vld [vmem:[%s922_s1 + $0x28] sm:$0xff]  ;;  %v35_v51 = vld [vmem:[%s922_s1 + $0x30] sm:$0x3] }
  0x1a   :  { %v271_v52 = vld [vmem:[%s924_s3] sm:$0xff]  ;;  %v274_v29 = vld [vmem:[%s924_s3 + $0x18] sm:$0x1] }
  0x1b   :  { %599 = vmatprep.mubr.msk.f32.mxu1 %vm299_vm3, %v271_v52 }
  0x1d   :  { %296 = vperm.xlu0 %654, %v278_v27   ;;  %411 = vperm.xlu1 %655, %v405_v28   ;;  %v272_v27 = vld [vmem:[%s924_s3 + $0x8] sm:$0xff]  ;;  %v273_v28 = vld [vmem:[%s924_s3 + $0x10] sm:$0xff]  ;;  %s684_s3 = smov [#allocation3]  }
  0x1e   :  { %620 = vmatpush3.bf16.xpose.msk.msra.mxu0 %vm737_vm1, %v618_v26  ;;  %s462_s6 = sshll.u32 %s684_s3, 4  ;;  %s463_s6 = int_to_ptr.vmem [resolvable:$true] %s462_s6 }
  0x1f   :  { %621 = vmatprep.subr.bf16.mxu0 %v680_v3  ;;  %s656_s30 = scalar_lea.vmem %s463_s6, 16  ;;  %s660_s8 = scalar_lea.vmem %s463_s6, 32 }
  0x20   :  { %p657_p0 = scmp.ne.s32.totalorder %s463_s6, %s656_s30  ;;  %p661_p1 = scmp.lt.s32.totalorder %s463_s6, %s463_s6 }
  0x21   :  { %416 = vperm.xlu0 %654, %v406_v31   ;;  %421 = vperm.xlu1 %655, %v407_v32   ;;  %p662_p2 = scmp.lt.s32.totalorder %s660_s8, %s656_s30 }
  0x23   :  { %p663_p3 = por %p662_p2, %p661_p1 }
  0x25   :  { %426 = vperm.xlu0 %654, %v408_v34   ;;  %447 = vperm.xlu1 %655, %v444_v35   ;;  %p664_p4 = pnand %p663_p3, %p657_p0 }
  0x26   :  { %624 = vmatpush3.bf16.xpose.msk.msra.mxu0 %vm737_vm1, %v622_v33 }
  0x27   :  { %625 = vmatprep.subr.bf16.mxu0 %v680_v3 }
  0x2e   :  { %628 = vmatpush3.bf16.xpose.msk.msra.mxu0 %vm737_vm1, %v626_v38 }
  0x2f   :  { %629 = vmatprep.subr.bf16.mxu0 %v680_v3 }
  0x36   :  { %632 = vmatpush3.bf16.xpose.msk.msra.mxu0 %vm737_vm1, %v630_v41 }
  0x37   :  { %633 = vmatprep.subr.bf16.mxu0 %v680_v3 }
  0x3e   :  { %636 = vmatpush3.bf16.xpose.msk.msra.mxu0 %vm737_vm1, %v634_v44 }
  0x45   :  { %565 = vmatmul.mubr.msk.f32.vlgmr.msra.gmra.mrb[0].mxu0 %vm94_vm0, %v29_v45 }
  0x46   :  { %567 = vmatprep.mubr.msk.f32.mxu0 %vm681_vm2, %v682_v6 }
  0x49   :  { %568 = vmatmul.mubr.msk.f32.gmra.mrb[2].mxu0 %vm94_vm0, %v30_v46 }
  0x4a   :  { %570 = vmatprep.mubr.msk.f32.mxu0 %vm681_vm2, %v682_v6 }
  0x4d   :  { %571 = vmatmul.mubr.msk.f32.gmra.mrb[4].mxu0 %vm94_vm0, %v31_v47 }
  0x4e   :  { %573 = vmatprep.mubr.msk.f32.mxu0 %vm681_vm2, %v682_v6 }
  0x51   :  { %574 = vmatmul.mubr.msk.f32.gmra.mrb[6].mxu0 %vm94_vm0, %v32_v48 }
  0x52   :  { %576 = vmatprep.mubr.msk.f32.mxu0 %vm681_vm2, %v682_v6 }
  0x55   :  { %577 = vmatmul.mubr.msk.f32.gmra.mrb[8].mxu0 %vm94_vm0, %v33_v49 }
  0x56   :  { %579 = vmatprep.mubr.msk.f32.mxu0 %vm681_vm2, %v682_v6 }
  0x59   :  { %580 = vmatmul.mubr.msk.f32.gmra.mrb[10].mxu0 %vm94_vm0, %v34_v50 }
  0x5a   :  { %582 = vmatprep.mubr.msk.f32.mxu0 %vm681_vm2, %v682_v6 }
  0x5d   :  { %583 = vmatmul.mubr.msk.f32.gmra.mrb[12].mxu0 %vm94_vm0, %v35_v51 }
  0x85   :  { %v62_v53 = vpop.permute.xlu0 %61 }
  0x86   :  { %v72_v61 = vpop.permute.xlu1 %71 }
  0x89   :  { %v67_v57 = vpop.permute.xlu0 %66 }
  0x8a   :  { %v77_v4 = vpop.permute.xlu1 %76 }
  0x90   :  { %v82_v13 = vpop.permute.xlu0 %81  ;;  %v87_v15 = vpop.permute.xlu1 %86 }
  0x94   :  { %v92_v21 = vpop.permute.xlu0 %91  ;;  %v282_v31 = vpop.permute.xlu1 %281 }
  0x98   :  { %v287_v30 = vpop.permute.xlu0 %286  ;;  %v292_v33 = vpop.permute.xlu1 %291 }
  0x9c   :  { %v297_v32 = vpop.permute.xlu0 %296  ;;  %v412_v39 = vpop.permute.xlu1 %411 }
  0xa0   :  { %v417_v37 = vpop.permute.xlu0 %416  ;;  %v422_v52 = vpop.permute.xlu1 %421 }
  0xa4   :  { %v427_v49 = vpop.permute.xlu0 %426 }
 0x118   :  { %v230_v54 = vpop.f32.mrb[0].mxu0 }
 0x119   :  { %v566_v55 = vpop.f32.mrb[1].mxu0  ;;  %v231_v56 = vadd.f32 %v230_v54, %v62_v53 }
 0x11b   :  { %v264_v62 = vmax.f32 %v231_v56, 0.0 }
 0x11c   :  { %v235_v58 = vpop.f32.mrb[2].mxu0 }
 0x11d   :  { %v236_v59 = vadd.f32 %v235_v58, %v67_v57  ;;  %v569_v60 = vpop.f32.mrb[3].mxu0  ;;  %v450_v57 = vlaneseq }
 0x11f   :  { %v265_v63 = vmax.f32 %v236_v59, 0.0  ;;  %v451_v60 = vshrl.u32 %v450_v57, 7 }
 0x120   :  { %v240_v0 = vpop.f32.mrb[4].mxu0 }
 0x121   :  { %v572_v1 = vpop.f32.mrb[5].mxu0  ;;  %v637_v2 = vpack.c.bf16 %v265_v63, %v264_v62  ;;  %v241_v3 = vadd.f32 %v240_v0, %v72_v61  ;;  %v452_v63 = vsub.s32 0, %v451_v60 }
 0x122   :  { %v448_v1 = vpop.permute.xlu1 %447 }
 0x123   :  { %638 = vmatprep.subr.bf16.mxu1 %v637_v2  ;;  %v266_v8 = vmax.f32 %v241_v3, 0.0  ;;  %v453_v3 = vrot.slane %v448_v1, %v452_v63 }
 0x124   :  { %v245_v5 = vpop.f32.mrb[6].mxu0  ;;  %640 = vmatpush3.bf16.msra.mxu1 %v637_v2 }
 0x125   :  { %v246_v6 = vadd.f32 %v245_v5, %v77_v4  ;;  %v575_v7 = vpop.f32.mrb[7].mxu0 }
 0x127   :  { %v267_v9 = vmax.f32 %v246_v6, 0.0 }
 0x128   :  { %v250_v10 = vpop.f32.mrb[8].mxu0 }
 0x129   :  { %v641_v11 = vpack.c.bf16 %v267_v9, %v266_v8  ;;  %v578_v12 = vpop.f32.mrb[9].mxu0  ;;  %v251_v14 = vadd.f32 %v250_v10, %v82_v13 }
 0x12b   :  { %642 = vmatprep.subr.bf16.mxu1 %v641_v11  ;;  %v268_v19 = vmax.f32 %v251_v14, 0.0 }
 0x12c   :  { %v255_v16 = vpop.f32.mrb[10].mxu0  ;;  %644 = vmatpush3.bf16.msra.mxu1 %v641_v11 }
 0x12d   :  { %v256_v17 = vadd.f32 %v255_v16, %v87_v15  ;;  %v581_v18 = vpop.f32.mrb[11].mxu0 }
 0x12f   :  { %v269_v20 = vmax.f32 %v256_v17, 0.0 }
 0x130   :  { %v260_v22 = vpop.f32.mrb[12].mxu0 }
 0x131   :  { %v645_v23 = vpack.c.bf16 %v269_v20, %v268_v19  ;;  %v261_v24 = vadd.f32 %v260_v22, %v92_v21  ;;  %v584_v25 = vpop.f32.mrb[13].mxu0 }
 0x133   :  { %v270_v26 = vmax.f32 %v261_v24, 0.0  ;;  %646 = vmatprep.subr.bf16.mxu1 %v645_v23 }
 0x134   :  { %648 = vmatpush3.bf16.msra.mxu1 %v645_v23 }
 0x135   :  { %597 = vmatprep.subr.msk.mxu1 %vm312_vm4, %v270_v26 }
 0x138   :  { %598 = vmatpush3.msk.msra.mxu1 %vm312_vm4, %v270_v26 }
 0x139   :  { %600 = vmatmul.mubr.msk.f32.vlgmr.msra.gmra.mrb[0].mxu1 %vm299_vm3, %v272_v27 }
 0x13a   :  { %602 = vmatprep.mubr.msk.f32.mxu1 %vm299_vm3, %v273_v28 }
 0x13d   :  { %603 = vmatmul.mubr.msk.f32.gmra.mrb[2].mxu1 %vm299_vm3, %v274_v29 }
 0x20c   :  { %v601_v34 = vpop.f32.mrb[0].mxu1 }
 0x20d   :  { %v388_v35 = vadd.f32 %v601_v34, %v287_v30  ;;  %v382_v36 = vpop.f32.mrb[1].mxu1 }
 0x20e   :  { %v383_v38 = vadd.f32 %v382_v36, %v282_v31 }
 0x20f   :  { %v402_v40 = vmax.f32 %v388_v35, 0.0 }
 0x210   :  { %v401_v41 = vmax.f32 %v383_v38, 0.0  ;;  %v604_v42 = vpop.f32.mrb[2].mxu1 }
 0x211   :  { %v430_v43 = vmul.f32 %v417_v37, %v402_v40  ;;  %v398_v44 = vadd.f32 %v604_v42, %v297_v32  ;;  %v392_v45 = vpop.f32.mrb[3].mxu1 }
 0x212   :  { %v429_v46 = vmul.f32 %v412_v39, %v401_v41  ;;  %v393_v47 = vadd.f32 %v392_v45, %v292_v33 }
 0x213   :  { %v404_v48 = vmax.f32 %v398_v44, 0.0 }
 0x214   :  { %v433_v50 = vadd.f32 %v430_v43, %v429_v46  ;;  %v403_v51 = vmax.f32 %v393_v47, 0.0 }
 0x215   :  { %v432_v53 = vmul.f32 %v427_v49, %v404_v48 }
 0x216   :  { %v431_v54 = vmul.f32 %v422_v52, %v403_v51 }
 0x217   :  { %v436_v56 = vsel %vm435_vm5, %v432_v53, 0.0 }
 0x218   :  { %v434_v55 = vadd.f32 %v433_v50, %v431_v54 }
 0x21a   :  { %v437_v58 = vadd.f32 %v436_v56, %v434_v55 }
 0x21c   :  { %v438_v59 = vrot.slane %v437_v58, 4 }
 0x21e   :  { %v439_v61 = vadd.f32 %v438_v59, %v437_v58 }
 0x220   :  { %v440_v62 = vrot.slane %v439_v61, 2 }
 0x222   :  { %v441_v0 = vadd.f32 %v440_v62, %v439_v61 }
 0x224   :  { %v442_v2 = vrot.slane %v441_v0, 1 }
 0x226   :  { %v443_v4 = vadd.f32 %v442_v2, %v441_v0 }
 0x228   :  { %v454_v5 = vadd.f32 %v453_v3, %v443_v4 }
 0x22a   :  { %455 = vst [vmem:[#allocation3] sm:$0x1] %v454_v5 }
 0x22b   :  { %667 = shalt.err (!%p664_p4)
}
 0x22c   :  { %s668_s10 = scalar_lea.hbm %s928_s7, 16 }
 0x22d   :  { %p669_p5 = scmp.ne.s32.totalorder %s928_s7, %s668_s10  ;;  %p672_p6 = scmp.lt.u32.totalorder %s668_s10, %s928_s7 }
 0x22f   :  { %p674_p7 = pnand %p672_p6, %p669_p5 }
 0x231   :  { %677 = shalt.err (!%p674_p7)
}
 0x232   :  { %465 = dma.vmem_to_hbm [thread:$0]  %s463_s6, 16, %s928_s7, [#allocation4]  }
 0x233   :  { %678 = dma.done.wait [#allocation4], 16  }
 0x234   :  { %679 = vsyncadd [#allocation4], 4294967280 }
 0x235   :  { %469 = vsyncpa [#allocation4], 1 }

</bundles_post_ra>
